<compile_context>
chip_gen: v7x
topology: tpu7x:2x2x1
jax: 0.10.0
libtpu: 0.0.40
codegen_flags: <defaults>
</compile_context>

<pallas_src>
import jax
import jax.numpy as jnp
from jax import lax
from jax.experimental import pallas as pl
from jax.experimental.pallas import tpu as pltpu


def _cdiv(a: int, b: int) -> int:
    return (a + b - 1) // b


def _round_up(a: int, b: int) -> int:
    return _cdiv(a, b) * b


def _device_kind() -> str:
    try:
        return jax.devices()[0].device_kind.lower()
    except Exception:
        return ""


def _tensorcore_config():
    """(num_tensorcores, leading-axis dimension semantics)."""
    kind = _device_kind()
    if "v7" in kind:
        # v7x: 2 TensorCores per chip; CORE_PARALLEL shards the axis per-core.
        lead = getattr(pltpu, "CORE_PARALLEL", "parallel")
        return 2, lead
    if "v4" in kind or "v5p" in kind:
        # Megacore chips: plain "parallel" shards the leading axis.
        return 2, "parallel"
    # v5e / v6e: single TensorCore.
    return 1, "parallel"


def _vmem_config():
    """(per-DMA-buffer byte budget, scoped vmem_limit_bytes) for this chip."""
    phys = None
    try:
        phys = int(pltpu.get_tpu_info().vmem_capacity_bytes)
    except Exception:
        phys = None
    if phys is None:
        phys = 64 * 1024 * 1024 if "v7" in _device_kind() else 128 * 1024 * 1024
    if phys <= 64 * 1024 * 1024:
        # v7x-class: 64 MiB physical VMEM per TensorCore.
        return 4 * 1024 * 1024, 40 * 1024 * 1024
    # v5e / v6e: 128 MiB physical VMEM.
    return 6 * 1024 * 1024, 64 * 1024 * 1024


def _make_focal_loss_kernel(alpha: float, gamma: float, n_total: int, tm: int):
    gamma_is_small_int = (float(gamma) == int(gamma)) and (0 <= int(gamma) <= 8)

    def focal_weight(one_minus_pt):
        # (1 - pt) ** gamma specialized for small integer gamma: VPU multiplies
        # instead of EUP exp/log, and NaN-safe when 1 - pt rounds negative.
        if gamma_is_small_int:
            g = int(gamma)
            if g == 0:
                return jnp.ones_like(one_minus_pt)
            w = one_minus_pt
            for _ in range(g - 1):
                w = w * one_minus_pt
            return w
        return jnp.power(one_minus_pt, gamma)

    def kernel(logits_ref, targets_ref, out_ref, acc_ref):
        gi = pl.program_id(0)          # per-TensorCore group
        ti = pl.program_id(1)          # "arbitrary" reduction step within group
        t_total = pl.num_programs(1)

        @pl.when(ti == 0)
        def _():
            acc_ref[...] = jnp.zeros_like(acc_ref)

        raw = logits_ref[...]                                   # (TM, C) input dtype
        # Row max on the raw tile: bf16 max is exact and touches half the vregs.
        row_max = jnp.max(raw, axis=-1, keepdims=True).astype(jnp.float32)
        logits = raw.astype(jnp.float32)                        # (TM, C) f32
        tgt = targets_ref[...]                                  # (TM, 1) int32
        tm_, c = logits.shape

        # Numerically stable softmax pieces.
        shifted = logits - row_max
        exp_shifted = jnp.exp(shifted)
        sum_exp = jnp.sum(exp_shifted, axis=-1, keepdims=True)
        lse = jnp.log(sum_exp)

        # One-hot gather of the target logit via lane-iota compare
        # (no gather op on TPU).  Single cross-lane reduce.
        col_ids = lax.broadcasted_iota(jnp.int32, (tm_, c), 1)
        onehot = col_ids == tgt
        tgt_shifted = jnp.sum(jnp.where(onehot, shifted, 0.0), axis=-1,
                              keepdims=True)                    # (TM, 1)

        ce = lse - tgt_shifted                                  # cross-entropy / row
        # pt = exp(-ce) = exp(tgt_shifted) / sum_exp : a (TM,1) exp on the EUP
        # replaces the previous second (TM,C) select + cross-lane reduce.
        pt = jnp.exp(tgt_shifted) * pl.reciprocal(sum_exp, approx=False)
        one_minus_pt = jnp.maximum(1.0 - pt, 0.0)               # clamp rounding
        focal = focal_weight(one_minus_pt) * ce
        if alpha != 1.0:
            focal = alpha * focal                               # (TM, 1)

        # Zero rows beyond N (ragged tail + clamped padding grid steps) with a
        # SELECT, so NaN/Inf from garbage OOB rows never reaches the accumulator.
        tile = gi * t_total + ti
        row_ids = tile * tm + lax.broadcasted_iota(jnp.int32, (tm_, 1), 0)
        focal = jnp.where(row_ids < n_total, focal, 0.0)

        acc_ref[...] += focal                                   # VPU accumulate

        @pl.when(ti == t_total - 1)
        def _():
            out_ref[...] = jnp.sum(acc_ref[...]).reshape(1, 1, 1)

    return kernel


def focal_loss(inputs: jax.Array, targets: jax.Array,
               alpha: float = 1.0, gamma: float = 2.0,
               reduction: str = "mean",
               block_rows: int | None = None,
               num_groups: int | None = None) -> jax.Array:
    """Pallas TPU implementation of FocalLoss.forward.

    inputs:  (N, C) float logits (f32 or bf16 — fed to the kernel as-is)
    targets: (N,)   int class indices
    returns: scalar float32 loss
    """
    assert reduction in ("mean", "sum")
    n, c = inputs.shape
    itemsize = jnp.dtype(inputs.dtype).itemsize

    per_buf, vmem_limit = _vmem_config()
    num_tc, lead_sem = _tensorcore_config()

    # Row-tile size: sized from the VMEM budget (not a fixed default).
    #   dma_cap : keeps one double-buffered logits DMA tile within `per_buf`.
    #   work_cap: keeps ~6 live (TM, C) f32/i32 softmax temps under half the
    #             scoped VMEM limit (intermediates are f32 regardless of input).
    dma_cap = per_buf // max(1, c * itemsize)
    work_cap = (vmem_limit // 2) // max(1, c * 4 * 6)
    cap = max(8, (min(dma_cap, work_cap) // 8) * 8)
    if block_rows is not None:
        tm = min(int(block_rows), cap)          # explicit override, VMEM-safe
    else:
        tm = cap
    tm = min(tm, _round_up(n, 8))
    tm = max(8, (tm // 8) * 8)

    num_tiles = _cdiv(n, tm)
    g = num_tc if num_groups is None else int(num_groups)
    g = max(1, min(g, num_tiles))
    t_per_g = _cdiv(num_tiles, g)

    targets_2d = targets.astype(jnp.int32).reshape(n, 1)

    def tile_index(gi, ti):
        # Clamp padding grid steps onto the last real tile; the kernel zeroes
        # their rows (row_ids >= N) so they contribute nothing.
        return jnp.minimum(gi * t_per_g + ti, num_tiles - 1)

    kernel = _make_focal_loss_kernel(float(alpha), float(gamma), n, tm)

    if isinstance(lead_sem, str):
        dim_sem = (lead_sem, "arbitrary")
    else:
        dim_sem = (lead_sem, getattr(pltpu, "ARBITRARY", "arbitrary"))

    partials = pl.pallas_call(
        kernel,
        out_shape=jax.ShapeDtypeStruct((g, 1, 1), jnp.float32),
        grid_spec=pltpu.PrefetchScalarGridSpec(
            num_scalar_prefetch=0,
            grid=(g, t_per_g),
            in_specs=[
                pl.BlockSpec((tm, c), lambda gi, ti: (tile_index(gi, ti), 0)),
                pl.BlockSpec((tm, 1), lambda gi, ti: (tile_index(gi, ti), 0)),
            ],
            out_specs=pl.BlockSpec((1, 1, 1), lambda gi, ti: (gi, 0, 0)),
            scratch_shapes=[pltpu.VMEM((tm, 1), jnp.float32)],
        ),
        compiler_params=pltpu.CompilerParams(
            dimension_semantics=dim_sem,
            vmem_limit_bytes=vmem_limit,
        ),
    )(inputs, targets_2d)

    total = jnp.sum(partials)
    if reduction == "mean":
        return total / jnp.float32(n)
    return total


def _focal_loss_ref(inputs, targets, alpha=1.0, gamma=2.0, reduction="mean"):
    """Plain-JAX reference (mirrors the PyTorch forward)."""
    logits = inputs.astype(jnp.float32)
    lse = jax.scipy.special.logsumexp(logits, axis=-1)
    tgt_logit = jnp.take_along_axis(logits, targets[:, None], axis=-1)[:, 0]
    ce = lse - tgt_logit
    pt = jnp.exp(-ce)
    fl = alpha * (1.0 - pt) ** gamma * ce
    return fl.mean() if reduction == "mean" else fl.sum()


if __name__ == "__main__":
    key = jax.random.PRNGKey(0)
    k1, k2, k3, k4 = jax.random.split(key, 4)

    # Case 1: ragged N with an explicit small block_rows override
    # (exercises multi-tile pipeline, tail masking, clamped padding steps).
    N1, C1 = 50, 40
    x1 = jax.random.normal(k1, (N1, C1), dtype=jnp.float32) * 3.0
    y1 = jax.random.randint(k2, (N1,), 0, C1, dtype=jnp.int32)
    loss1 = jax.block_until_ready(focal_loss(x1, y1, block_rows=16))
    ref1 = _focal_loss_ref(x1, y1)
    assert jnp.allclose(loss1, ref1, rtol=1e-5, atol=1e-5), (loss1, ref1)

    # Case 2: bf16 logits fed directly, auto (VMEM-budget) tile sizing,
    # sum reduction.
    N2, C2 = 64, 32
    x2 = jax.random.normal(k3, (N2, C2), dtype=jnp.float32).astype(jnp.bfloat16)
    y2 = jax.random.randint(k4, (N2,), 0, C2, dtype=jnp.int32)
    loss2 = jax.block_until_ready(focal_loss(x2, y2, reduction="sum"))
    ref2 = _focal_loss_ref(x2.astype(jnp.float32), y2, reduction="sum")
    assert jnp.allclose(loss2, ref2, rtol=1e-4, atol=1e-4), (loss2, ref2)

    print("KERNEL_OK")
</pallas_src>

<mosaic_0001>
module attributes {stable_mosaic.version = 11 : i64} {
  func.func @kernel(%arg0: i32, %arg1: i32, %arg2: memref<16x40xf32, #tpu.memory_space<vmem>>, %arg3: memref<16x1xi32, #tpu.memory_space<vmem>>, %arg4: memref<1x1x1xf32, #tpu.memory_space<vmem>>, %arg5: memref<16x1xf32, #tpu.memory_space<vmem>>) attributes {dimension_semantics = [#tpu.dimension_semantics<parallel>, #tpu.dimension_semantics<arbitrary>], iteration_bounds = array<i64: 1, 4>, scalar_prefetch = 0 : i64, scratch_operands = 1 : i64, tpu.core_type = #tpu.core_type<tc>, window_params = [{transform_indices = @transform_0, window_bounds = array<i64: 16, 40>}, {transform_indices = @transform_1, window_bounds = array<i64: 16, 1>}, {transform_indices = @transform_2, window_bounds = array<i64: 1, 1, 1>}]} {
    %c0_i32 = arith.constant 0 : i32
    %0 = arith.cmpi eq, %arg1, %c0_i32 : i32
    %1 = arith.extui %0 : i1 to i32
    %c0_i32_0 = arith.constant 0 : i32
    %2 = arith.cmpi ne, %1, %c0_i32_0 : i32
    scf.if %2 {
      %cst_15 = arith.constant 0.000000e+00 : f32
      %46 = vector.broadcast %cst_15 : f32 to vector<16x1xf32>
      %c0_16 = arith.constant 0 : index
      %c0_17 = arith.constant 0 : index
      %47 = vector.load %arg5[%c0_16, %c0_17] : memref<16x1xf32, #tpu.memory_space<vmem>>, vector<16x1xf32>
      tpu.vector_store %arg5[%c0_16, %c0_17], %46 {strides = array<i32>} : memref<16x1xf32, #tpu.memory_space<vmem>>, vector<16x1xf32>,
    } else {
    }
    %c0 = arith.constant 0 : index
    %c0_1 = arith.constant 0 : index
    %3 = vector.load %arg2[%c0, %c0_1] : memref<16x40xf32, #tpu.memory_space<vmem>>, vector<16x40xf32>
    %cst = arith.constant dense<0xFF800000> : vector<16xf32>
    %4 = vector.multi_reduction <maximumf>, %3, %cst [1] : vector<16x40xf32> to vector<16xf32>
    %5 = vector.shape_cast %4 : vector<16xf32> to vector<16x1xf32>
    %c0_2 = arith.constant 0 : index
    %c0_3 = arith.constant 0 : index
    %6 = vector.load %arg3[%c0_2, %c0_3] : memref<16x1xi32, #tpu.memory_space<vmem>>, vector<16x1xi32>
    %7 = vector.broadcast %5 : vector<16x1xf32> to vector<16x40xf32>
    %8 = arith.subf %3, %7 : vector<16x40xf32>
    %9 = math.exp %8 : vector<16x40xf32>
    %cst_4 = arith.constant dense<0.000000e+00> : vector<16xf32>
    %10 = vector.multi_reduction <add>, %9, %cst_4 [1] : vector<16x40xf32> to vector<16xf32>
    %11 = vector.shape_cast %10 : vector<16xf32> to vector<16x1xf32>
    %12 = math.log %11 : vector<16x1xf32>
    %13 = tpu.iota {dimensions = array<i32: 1>} : vector<16x40xi32>
    %14 = vector.broadcast %6 : vector<16x1xi32> to vector<16x40xi32>
    %15 = arith.cmpi eq, %13, %14 : vector<16x40xi32>
    %cst_5 = arith.constant 0.000000e+00 : f32
    %16 = vector.broadcast %cst_5 : f32 to vector<16x40xf32>
    %17 = arith.select %15, %8, %16 : vector<16x40xi1>, vector<16x40xf32>
    %cst_6 = arith.constant dense<0.000000e+00> : vector<16xf32>
    %18 = vector.multi_reduction <add>, %17, %cst_6 [1] : vector<16x40xf32> to vector<16xf32>
    %19 = vector.shape_cast %18 : vector<16xf32> to vector<16x1xf32>
    %20 = arith.subf %12, %19 : vector<16x1xf32>
    %21 = math.exp %19 : vector<16x1xf32>
    %22 = tpu.reciprocal %11 : vector<16x1xf32> -> vector<16x1xf32>
    %23 = arith.mulf %21, %22 : vector<16x1xf32>
    %cst_7 = arith.constant 1.000000e+00 : f32
    %24 = vector.broadcast %cst_7 : f32 to vector<16x1xf32>
    %25 = arith.subf %24, %23 : vector<16x1xf32>
    %cst_8 = arith.constant 0.000000e+00 : f32
    %26 = vector.broadcast %cst_8 : f32 to vector<16x1xf32>
    %27 = arith.maximumf %25, %26 : vector<16x1xf32>
    %28 = arith.mulf %27, %27 : vector<16x1xf32>
    %29 = arith.mulf %28, %20 : vector<16x1xf32>
    %c4_i32 = arith.constant 4 : i32
    %30 = arith.muli %arg0, %c4_i32 : i32
    %31 = arith.addi %30, %arg1 : i32
    %c16_i32 = arith.constant 16 : i32
    %32 = arith.muli %31, %c16_i32 : i32
    %33 = tpu.iota {dimensions = array<i32: 0>} : vector<16x1xi32>
    %34 = vector.broadcast %32 : i32 to vector<16x1xi32>
    %35 = arith.addi %34, %33 : vector<16x1xi32>
    %c50_i32 = arith.constant 50 : i32
    %36 = vector.broadcast %c50_i32 : i32 to vector<16x1xi32>
    %37 = arith.cmpi slt, %35, %36 : vector<16x1xi32>
    %cst_9 = arith.constant 0.000000e+00 : f32
    %38 = vector.broadcast %cst_9 : f32 to vector<16x1xf32>
    %39 = arith.select %37, %29, %38 : vector<16x1xi1>, vector<16x1xf32>
    %c0_10 = arith.constant 0 : index
    %c0_11 = arith.constant 0 : index
    %40 = vector.load %arg5[%c0_10, %c0_11] : memref<16x1xf32, #tpu.memory_space<vmem>>, vector<16x1xf32>
    %41 = arith.addf %40, %39 : vector<16x1xf32>
    %c0_12 = arith.constant 0 : index
    %c0_13 = arith.constant 0 : index
    %42 = vector.load %arg5[%c0_12, %c0_13] : memref<16x1xf32, #tpu.memory_space<vmem>>, vector<16x1xf32>
    tpu.vector_store %arg5[%c0_12, %c0_13], %41 {strides = array<i32>} : memref<16x1xf32, #tpu.memory_space<vmem>>, vector<16x1xf32>,
    %c3_i32 = arith.constant 3 : i32
    %43 = arith.cmpi eq, %arg1, %c3_i32 : i32
    %44 = arith.extui %43 : i1 to i32
    %c0_i32_14 = arith.constant 0 : i32
    %45 = arith.cmpi ne, %44, %c0_i32_14 : i32
    scf.if %45 {
      %c0_15 = arith.constant 0 : index
      %c0_16 = arith.constant 0 : index
      %46 = vector.load %arg5[%c0_15, %c0_16] : memref<16x1xf32, #tpu.memory_space<vmem>>, vector<16x1xf32>
      %47 = vector.shape_cast %46 : vector<16x1xf32> to vector<1x16x1xf32>
      %cst_17 = arith.constant dense<0.000000e+00> : vector<1xf32>
      %48 = vector.multi_reduction <add>, %47, %cst_17 [1, 2] : vector<1x16x1xf32> to vector<1xf32>
      %49 = vector.shape_cast %48 : vector<1xf32> to vector<1x1x1xf32>
      %50 = vector.extract %49[0, 0, 0] : f32 from vector<1x1x1xf32>
      %51 = vector.broadcast %50 : f32 to vector<1x1x1xf32>
      %c0_18 = arith.constant 0 : index
      %c0_19 = arith.constant 0 : index
      %c0_20 = arith.constant 0 : index
      %52 = vector.load %arg4[%c0_18, %c0_19, %c0_20] : memref<1x1x1xf32, #tpu.memory_space<vmem>>, vector<1x1x1xf32>
      tpu.vector_store %arg4[%c0_18, %c0_19, %c0_20], %51 {strides = array<i32>} : memref<1x1x1xf32, #tpu.memory_space<vmem>>, vector<1x1x1xf32>,
    } else {
    }
    return
  }
  func.func @transform_0(%arg0: i32, %arg1: i32) -> (i32, i32) {
    %c4_i32 = arith.constant 4 : i32
    %0 = arith.muli %arg0, %c4_i32 : i32
    %1 = arith.addi %0, %arg1 : i32
    %c3_i32 = arith.constant 3 : i32
    %2 = arith.minsi %1, %c3_i32 : i32
    %c0_i32 = arith.constant 0 : i32
    %c0_i32_0 = arith.constant 0 : i32
    return %2, %c0_i32 : i32, i32
  }
  func.func @transform_1(%arg0: i32, %arg1: i32) -> (i32, i32) {
    %c4_i32 = arith.constant 4 : i32
    %0 = arith.muli %arg0, %c4_i32 : i32
    %1 = arith.addi %0, %arg1 : i32
    %c3_i32 = arith.constant 3 : i32
    %2 = arith.minsi %1, %c3_i32 : i32
    %c0_i32 = arith.constant 0 : i32
    %c0_i32_0 = arith.constant 0 : i32
    return %2, %c0_i32 : i32, i32
  }
  func.func @transform_2(%arg0: i32, %arg1: i32) -> (i32, i32, i32) {
    %c0_i32 = arith.constant 0 : i32
    %c0_i32_0 = arith.constant 0 : i32
    %c0_i32_1 = arith.constant 0 : i32
    return %arg0, %c0_i32, %c0_i32_0 : i32, i32, i32
  }
}

</mosaic_0001>

<bundles_post_ra>
// kernel: tpu_custom_call.1
= control target key start
LH: loop header
LB: loop body
LE: loop exit
PB: predicated region body
PF: predicated region fallthrough
CT: control target
= control target key end

     0   :  { %7 = vsyncpa [#allocation4], 0  ;;  %s959_s0 = inlined_call_operand.hbm [shape: f32[50,40], index: 0, kind: input, shape index: {}]   ;;  %s960_s1 = inlined_call_operand.hbm [shape: s32[50,1], index: 1, kind: input, shape index: {}]   ;;  %s961_s2 = inlined_call_operand.hbm [shape: f32[1,1,1], index: 2, kind: output, shape index: {}]  }
   0x1   :  { %9 = vsyncpa [#allocation4 + $0x1], 0 }
   0x2   :  { %10 = vsyncpa [#allocation7], 0 }
   0x3   :  { %12 = vsyncpa [#allocation7 + $0x1], 0 }
   0x4   :  { %13 = vsyncpa [#allocation5], 0  ;;  %s743_s9 = smov 0   ;;  %s745_s10 = smov 0  }
   0x5   :  { %s747_s11 = smov 0   ;;  %s749_s12 = smov 0  }
   0x6   :  { %s751_s13 = smov 0   ;;  %s753_s14 = smov 0  }
   0x7 LB: > { %s28_s15 = sadd.s32 1, %s713_s13  ;;  %p37_p1 = scmp.lt.s32.totalorder %s713_s13, 3  ;;  %s717_s14 = sphi %s753_s14, %s19_s14   ;;  %s713_s13 = sphi %s751_s13, %s969_s13   ;;  %s709_s12 = sphi %s749_s12, %s968_s12   ;;  %s705_s11 = sphi %s747_s11, %s967_s11   ;;  %s701_s10 = sphi %s745_s10, %s966_s10   ;;  %s697_s9 = sphi %s743_s9, %s965_s9  }
   0x8   : > { %p29_p0 = scmp.ge.s32.totalorder %s28_s15, 4  ;;  %s465_s16 = sadd.s32 4294967295, %s717_s14  }
   0x9   : > { %p53_p2 = scmp.ne.s32.totalorder %s705_s11, %s701_s10  ;;  %p54_p4 = scmp.eq.s32.totalorder %s717_s14, 0 }
   0xa   : > { %s971_s15 = smov (%p29_p0, %s28_s15), 0  ;;  %p59_p5 = scmp.ne.s32.totalorder %s701_s10, %s697_s9 }
   0xb   : > { %s779_s17 = scalar_select %p37_p1, %s713_s13, 3 }
   0xc   : > { %p41_p3 = scmp.lt.s32.totalorder %s971_s15, 3  ;;  %p60_p6 = scmp.eq.s32.totalorder %s465_s16, 0 }
   0xd   : > { %p787_p7 = por %p54_p4, %p53_p2  ;;  %s46_s22 = sadd.s32 1, %s705_s11 }
   0xe   : > { %s42_s18 = scalar_select %p41_p3, %s971_s15, 3 }
   0xf   : > { %p791_p8 = por %p60_p6, %p59_p5  ;;  %p467_p10 = scmp.ge.s32.totalorder %s717_s14, 4 }
  0x10   : > { %s43_s21 = ssub.s32 %s779_s17, %s42_s18 }
  0x11   : > { %p44_p9 = scmp.eq.s32.totalorder %s43_s21, 0  ;;  %139 = sbr.rel (%p467_p10) target bundleno = 94 (0x5e), region = 16 }
  0x13   : > { %s798_s23 = scalar_select %p44_p9, %s705_s11, %s46_s22  }
  0x18   : > { %142 = sbr.rel (!%p787_p7) target bundleno = 59 (0x3b), region = 20  ;;  %s143_s24 = sand.u32 (%p787_p7), 1, %s705_s11  }
  0x19   : > { %s469_s25 = sshll.u32 (%p787_p7), %s779_s17, 1  ;;  %s468_s26 = sshll.u32 (%p787_p7), %s143_s24, 4 }
  0x1a   : > { %s153_s27 = ssub.s32 (%p787_p7), 7, %s469_s25  ;;  %s808_s30 = scalar_lea.sflag (%p787_p7), [#allocation4], %s143_s24 }
  0x1b   : > { %p154_p11 = scmp.lt.s32.totalorder (%p787_p7), %s153_s27, 2  ;;  %s147_s3 = scalar_lea.vmem (%p787_p7), [#allocation3], %s468_s26 }
  0x1f   : > { %s973_s27 = smov (!%p154_p11, %s153_s27), 2 }
  0x20   : > { %s805_s28 = sshll.u32 %s973_s27, 7 }
  0x21   : > { %s158_s29 = ssub.s32 256, %s805_s28 }
  0x22   : > { %159 = vsyncadd %s808_s30, %s158_s29  ;;  %p471_p12 = scmp.ne.s32.totalorder %s805_s28, 0  ;;  %s492_s4 = sshll.u32 %s779_s17, 8 }
  0x23   : > { %s816_s7 = scalar_lea.hbm %s959_s0, %s492_s4  ;;  %s164_s8 = sshll.u32 %s147_s3, 4  ;;  %s818_s8 = int_to_ptr.vmem [resolvable:$true] %s164_s8 }
  0x24   : > { %s577_s9 = scalar_lea.hbm %s816_s7, %s805_s28  ;;  %s581_s22 = scalar_lea.hbm %s959_s0, 896 }
  0x25   : > { %p578_p13 = scmp.ne.s32.totalorder %s816_s7, %s577_s9  ;;  %p582_p2 = scmp.lt.u32.totalorder %s816_s7, %s959_s0 }
  0x26   : > { %p583_p3 = scmp.lt.u32.totalorder %s581_s22, %s577_s9  ;;  %p585_p5 = scmp.lt.u32.totalorder %s577_s9, %s816_s7 }
  0x27   : > { %p579_p0 = pnand %p578_p13, %p471_p12 }
  0x28   : > { %p584_p4 = por %p583_p3, %p582_p2 }
  0x29   : > { %p580_p1 = pneg %p579_p0 }
  0x2a   : > { %p586_p6 = por %p585_p5, %p584_p4 }
  0x2c   : > { %p587_p9 = pnand %p586_p6, %p580_p1 }
  0x2e   : > { %590 = shalt.err (!%p587_p9)
}
  0x2f   : > { %s591_s26 = scalar_lea.vmem %s818_s8, %s805_s28  ;;  %s719_s27 = smov [#allocation3]  }
  0x30   : > { %p592_p10 = scmp.ne.s32.totalorder %s818_s8, %s591_s26  ;;  %s595_s29 = sshll.u32 %s719_s27, 4  ;;  %s596_s29 = int_to_ptr.vmem [resolvable:$false] %s595_s29 }
  0x31   : > { %s597_s3 = scalar_lea.vmem %s596_s29, 512  ;;  %p598_p0 = scmp.lt.s32.totalorder %s818_s8, %s596_s29 }
  0x32   : > { %p593_p11 = pnand %p592_p10, %p471_p12  ;;  %p599_p2 = scmp.lt.s32.totalorder %s597_s3, %s591_s26 }
  0x34   : > { %p594_p13 = pneg %p593_p11  ;;  %p600_p3 = por %p599_p2, %p598_p0 }
  0x36   : > { %p601_p4 = pnand %p600_p3, %p594_p13 }
  0x38   : > { %604 = shalt.err (!%p601_p4)
}
  0x39   : > { %s720_s4 = smov 128   ;;  %s721_s5 = smov 8  }
  0x3a   : > { %170 = dma.hbm_to_vmem [thread:$0]  (%p471_p12), %s816_s7, %s805_s28, %s818_s8, %s808_s30, %s720_s4, %s720_s4, %s721_s5  }
  0x3b PF: > { %173 = sbr.rel (!%p787_p7) target bundleno = 94 (0x5e), region = 24  ;;  %s174_s6 = sand.u32 (%p787_p7), 1, %s705_s11  }
  0x3c   : > { %s476_s9 = sshll.u32 (%p787_p7), %s779_s17, 1  ;;  %s475_s18 = sshll.u32 (%p787_p7), %s174_s6, 4 }
  0x3d   : > { %s184_s21 = ssub.s32 (%p787_p7), 7, %s476_s9  ;;  %s852_s25 = scalar_lea.sflag (%p787_p7), [#allocation7], %s174_s6 }
  0x3e   : > { %p185_p1 = scmp.lt.s32.totalorder (%p787_p7), %s184_s21, 2  ;;  %s178_s28 = scalar_lea.vmem (%p787_p7), [#allocation6], %s475_s18 }
  0x42   : > { %s975_s21 = smov (!%p185_p1, %s184_s21), 2 }
  0x43   : > { %s849_s22 = sshll.u32 %s975_s21, 7 }
  0x44   : > { %s189_s24 = ssub.s32 256, %s849_s22 }
  0x45   : > { %190 = vsyncadd %s852_s25, %s189_s24  ;;  %p478_p7 = scmp.ne.s32.totalorder %s849_s22, 0  ;;  %s493_s19 = sshll.u32 %s779_s17, 8 }
  0x46   : > { %s860_s8 = scalar_lea.hbm %s960_s1, %s493_s19  ;;  %s195_s26 = sshll.u32 %s178_s28, 4  ;;  %s862_s26 = int_to_ptr.vmem [resolvable:$true] %s195_s26 }
  0x47   : > { %s605_s27 = scalar_lea.hbm %s860_s8, %s849_s22  ;;  %s609_s17 = scalar_lea.hbm %s960_s1, 896 }
  0x48   : > { %p606_p12 = scmp.ne.s32.totalorder %s860_s8, %s605_s27  ;;  %p610_p9 = scmp.lt.u32.totalorder %s860_s8, %s960_s1 }
  0x49   : > { %p611_p10 = scmp.lt.u32.totalorder %s609_s17, %s605_s27  ;;  %p613_p13 = scmp.lt.u32.totalorder %s605_s27, %s860_s8 }
  0x4a   : > { %p607_p5 = pnand %p606_p12, %p478_p7 }
  0x4b   : > { %p612_p11 = por %p611_p10, %p610_p9 }
  0x4c   : > { %p608_p6 = pneg %p607_p5 }
  0x4d   : > { %p614_p0 = por %p613_p13, %p612_p11 }
  0x4f   : > { %p615_p2 = pnand %p614_p0, %p608_p6 }
  0x51   : > { %618 = shalt.err (!%p615_p2)
}
  0x52   : > { %s619_s6 = scalar_lea.vmem %s862_s26, %s849_s22  ;;  %s722_s9 = smov [#allocation6]  }
  0x53   : > { %p620_p3 = scmp.ne.s32.totalorder %s862_s26, %s619_s6  ;;  %s623_s18 = sshll.u32 %s722_s9, 4  ;;  %s624_s18 = int_to_ptr.vmem [resolvable:$false] %s623_s18 }
  0x54   : > { %s625_s21 = scalar_lea.vmem %s624_s18, 512  ;;  %p626_p12 = scmp.lt.s32.totalorder %s862_s26, %s624_s18 }
  0x55   : > { %p621_p4 = pnand %p620_p3, %p478_p7  ;;  %p627_p5 = scmp.lt.s32.totalorder %s625_s21, %s619_s6 }
  0x57   : > { %p622_p1 = pneg %p621_p4  ;;  %p628_p9 = por %p627_p5, %p626_p12 }
  0x59   : > { %p629_p10 = pnand %p628_p9, %p622_p1 }
  0x5b   : > { %632 = shalt.err (!%p629_p10)
}
  0x5c   : > { %s723_s24 = smov 128   ;;  %s724_s28 = smov 8  }
  0x5d   : > { %201 = dma.hbm_to_vmem [thread:$0]  (%p478_p7), %s860_s8, %s849_s22, %s862_s26, %s852_s25, %s723_s24, %s723_s24, %s724_s28  }
  0x5e PF: > { %p482_p6 = scmp.ge.s32.totalorder %s717_s14, 1  ;;  %p203_p11 = scmp.lt.s32.totalorder %s717_s14, 5 }
  0x60   : > { %p204_p13 = pnand %p482_p6, %p203_p11 }
  0x61   : > { %s209_s19 = sand.u32 (!%p204_p13), 1, %s701_s10  }
  0x62   : > { %207 = sbr.rel (%p204_p13) target bundleno = 690 (0x2b2), region = 28  ;;  %s483_s30 = sshll.u32 (!%p204_p13), %s209_s19, 4 }
  0x63   : > { %s210_s7 = scalar_lea.sflag (!%p204_p13), [#allocation4], %s209_s19  ;;  %s213_s27 = scalar_lea.vmem (!%p204_p13), [#allocation3], %s483_s30 }
  0x69   : > { %684 = dma.done.wait (%p791_p8), %s210_s7, 256  }
  0x6a   : > { %686 = vsyncadd (%p791_p8), %s210_s7, 4294967040  ;;  %s219_s22 = scalar_lea.sflag [#allocation7], %s209_s19  ;;  %s222_s25 = scalar_lea.vmem [#allocation6], %s483_s30 }
  0x6b   : > { %688 = dma.done.wait (%p791_p8), %s219_s22, 256  }
  0x6c   : > { %690 = vsyncadd (%p791_p8), %s219_s22, 4294967040  ;;  %p485_p7 = scmp.ne.s32.totalorder %s709_s12, 0 }
  0x6d   : > { %vm265_vm0 = vcmask (!%p485_p7), 7168   ;;  %v725_v0 = vmov (!%p485_p7), 0.0  }
  0x6e   : > { %264 = sbr.rel (%p485_p7) target bundleno = 117 (0x75), region = 40  ;;  %266 = vst.msk [vmem:[#allocation2] sm:$0xff] (!%p485_p7), %vm265_vm0, %v725_v0  ;;  %267 = vst.msk [vmem:[#allocation2 + $0x8] sm:$0xff] (!%p485_p7), %vm265_vm0, %v725_v0 }
  0x75 PF: > { %v268_v1 = vld [vmem:[%s213_s27] sm:$0xff]  ;;  %vm270_vm1 = vcmask 326656   ;;  %v269_v2 = vld [vmem:[%s213_s27 + $0x8] sm:$0xff]  ;;  %v726_v5 = vmov 0   ;;  %v295_v8 = vlaneseq  ;;  %s486_s20 = sshll.u32 %s709_s12, 4  ;;  %vm348_vm5 = vcmask 7168  }
  0x76   : > { %v277_v3 = vld [vmem:[%s222_s25] sm:$0xff]  ;;  %v271_v4 = vsel %vm270_vm1, %v268_v1, -inf  ;;  %559 = vset.pattern.permute.xlu1 %v726_v5  ;;  %560 = vset.pattern.permute.xlu0 %v726_v5  ;;  %v274_v6 = vsel %vm270_vm1, %v269_v2, -inf  ;;  %v278_v7 = vld [vmem:[%s222_s25 + $0x8] sm:$0xff]  ;;  %v337_v36 = vstv %s486_s20  ;;  %p487_p8 = scmp.ne.s32.totalorder %s709_s12, 3 }
  0x77   : > { %272 = vmax.xlane.f32.xlu0 %v271_v4  ;;  %298 = vperm.xlu1 %559, %v277_v3   ;;  %v296_v10 = vand.u32 127, %v295_v8  ;;  %v335_v35 = vshrl.u32 %v295_v8, 7  ;;  %v344_v52 = vld [vmem:[#allocation2] sm:$0xff]  ;;  %v345_v59 = vld [vmem:[#allocation2 + $0x8] sm:$0xff]  ;;  %vm370_vm7 = vcmask (!%p487_p8), 0  }
  0x79   : > { %v336_v43 = vadd.s32 8, %v335_v35  ;;  %v338_v44 = vadd.s32 %v337_v36, %v335_v35 }
  0x7b   : > { %275 = vmax.xlane.f32.xlu0 %v274_v6  ;;  %301 = vperm.xlu1 %559, %v278_v7   ;;  %v339_v51 = vadd.s32 %v337_v36, %v336_v43  ;;  %vm340_vm4 = vcmp.lt.s32.totalorder %v338_v44, 50 }
  0x7d   : > { %vm341_vm6 = vcmp.lt.s32.totalorder %v339_v51, 50 }
  0xf6   : > { %v299_v9 = vpop.permute.xlu1 %298 }
  0xf7   : > { %vm303_vm2 = vcmp.eq.s32.totalorder %v296_v10, %v299_v9 }
  0xfa   : > { %v302_v13 = vpop.permute.xlu1 %301 }
  0xfb   : > { %vm304_vm3 = vcmp.eq.s32.totalorder %v296_v10, %v302_v13 }
 0x104   : > { %v273_v11 = vpop.xlane.xlu0 %272 }
 0x105   : > { %v279_v12 = vsub.f32 %v268_v1, %v273_v11 }
 0x107   : > { %v281_v14 = vmul.f32 1.442695, %v279_v12  ;;  %v305_v15 = vsel %vm303_vm2, %v279_v12, 0.0 }
 0x108   : > { %v276_v16 = vpop.xlane.xlu0 %275  ;;  %v307_v17 = vsel %vm270_vm1, %v305_v15, 0.0 }
 0x109   : > { %561 = vpow2.f32 %v281_v14  ;;  %v280_v18 = vsub.f32 %v269_v2, %v276_v16  ;;  %308 = vadd.xlane.f32.xlu0 %v307_v17 }
 0x10b   : > { %v283_v19 = vmul.f32 1.442695, %v280_v18  ;;  %v306_v20 = vsel %vm304_vm3, %v280_v18, 0.0 }
 0x10c   : > { %v310_v21 = vsel %vm270_vm1, %v306_v20, 0.0 }
 0x10d   : > { %563 = vpow2.f32 %v283_v19  ;;  %311 = vadd.xlane.f32.xlu1 %v310_v21 }
 0x113   : > { %v562_v22 = vpop.eup %561 }
 0x114   : > { %v285_v23 = vsel %vm270_vm1, %v562_v22, 0.0 }
 0x115   : > { %286 = vadd.xlane.f32.xlu0 %v285_v23 }
 0x117   : > { %v564_v24 = vpop.eup %563 }
 0x118   : > { %v288_v25 = vsel %vm270_vm1, %v564_v24, 0.0 }
 0x119   : > { %289 = vadd.xlane.f32.xlu0 %v288_v25 }
 0x196   : > { %v309_v26 = vpop.xlane.xlu0 %308 }
 0x197   : > { %v315_v27 = vmul.f32 1.442695, %v309_v26 }
 0x199   : > { %565 = vpow2.f32 %v315_v27 }
 0x19a   : > { %v312_v28 = vpop.xlane.xlu1 %311 }
 0x19b   : > { %v317_v29 = vmul.f32 1.442695, %v312_v28 }
 0x1a2   : > { %v287_v30 = vpop.xlane.xlu0 %286 }
 0x1a3   : > { %567 = vlog2.f32 %v287_v30  ;;  %v566_v32 = vpop.eup %565 }
 0x1a4   : > { %569 = vrcp.f32 %v287_v30 }
 0x1a5   : > { %571 = vpow2.f32 %v317_v29 }
 0x1a6   : > { %v290_v31 = vpop.xlane.xlu0 %289 }
 0x1a7   : > { %573 = vlog2.f32 %v290_v31 }
 0x1a8   : > { %575 = vrcp.f32 %v290_v31 }
 0x1ad   : > { %v568_v33 = vpop.eup %567 }
 0x1ae   : > { %v570_v34 = vpop.eup %569  ;;  %v292_v40 = vmul.f32 0.6931472, %v568_v33 }
 0x1af   : > { %v321_v37 = vmul.f32 %v570_v34, %v566_v32  ;;  %v572_v38 = vpop.eup %571 }
 0x1b0   : > { %v313_v47 = vsub.f32 %v292_v40, %v309_v26 }
 0x1b1   : > { %v574_v39 = vpop.eup %573  ;;  %v323_v41 = vsub.f32 1.0, %v321_v37 }
 0x1b2   : > { %v576_v42 = vpop.eup %575  ;;  %v294_v49 = vmul.f32 0.6931472, %v574_v39 }
 0x1b3   : > { %v325_v45 = vmax.f32 %v323_v41, 0.0  ;;  %v322_v46 = vmul.f32 %v576_v42, %v572_v38 }
 0x1b4   : > { %v314_v56 = vsub.f32 %v294_v49, %v312_v28 }
 0x1b5   : > { %v327_v48 = vmul.f32 %v325_v45, %v325_v45  ;;  %v324_v50 = vsub.f32 1.0, %v322_v46 }
 0x1b7   : > { %v329_v53 = vmul.f32 %v327_v48, %v313_v47  ;;  %v326_v54 = vmax.f32 %v324_v50, 0.0 }
 0x1b9   : > { %v342_v55 = vsel %vm340_vm4, %v329_v53, 0.0  ;;  %v328_v57 = vmul.f32 %v326_v54, %v326_v54 }
 0x1ba   : > { %v346_v58 = vadd.f32 %v344_v52, %v342_v55  ;;  %354 = sbr.rel (%p487_p8) target bundleno = 665 (0x299), region = 44 }
 0x1bb   : > { %v330_v60 = vmul.f32 %v328_v57, %v314_v56 }
 0x1bc   : > { %349 = vst.msk [vmem:[#allocation2] sm:$0xff] %vm348_vm5, %v346_v58 }
 0x1bd   : > { %v343_v61 = vsel %vm341_vm6, %v330_v60, 0.0 }
 0x1be   : > { %v347_v62 = vadd.f32 %v345_v59, %v343_v61 }
 0x1c0   : > { %350 = vst.msk [vmem:[#allocation2 + $0x8] sm:$0xff] %vm348_vm5, %v347_v62 }
 0x1c3   : > { %v355_v63 = vld [vmem:[#allocation2] sm:$0xff] }
 0x1c4   : > { %v357_v1 = vsel %vm348_vm5, %v355_v63, 0.0 }
 0x1c7   : > { %v356_v0 = vld [vmem:[#allocation2 + $0x8] sm:$0xff] }
 0x1c8   : > { %v358_v2 = vsel %vm348_vm5, %v356_v0, 0.0 }
 0x1c9   : > { %v359_v3 = vadd.f32 %v358_v2, %v357_v1 }
 0x1cb   : > { %360 = vadd.xlane.f32.xlu0 %v359_v3 }
 0x258   : > { %v361_v4 = vpop.xlane.xlu0 %360 }
 0x259   : > { %v362_v5 = vrot.slane %v361_v4, 4 }
 0x25b   : > { %v363_v6 = vadd.f32 %v362_v5, %v361_v4 }
 0x25d   : > { %v364_v7 = vrot.slane %v363_v6, 2 }
 0x25f   : > { %v365_v8 = vadd.f32 %v364_v7, %v363_v6 }
 0x261   : > { %v366_v9 = vrot.slane %v365_v8, 1 }
 0x263   : > { %v367_v10 = vadd.f32 %v366_v9, %v365_v8 }
 0x265   : > { %494 = vpush %v367_v10 }
 0x296   : > { %s495_s8 = spop %494 }
 0x297   : > { %v369_v11 = vstv %s495_s8 }
 0x298   : > { %371 = vst.msk [vmem:[#allocation8] sm:$0x1] %vm370_vm7, %v369_v11 }
 0x299 PF: > { %p915_p0 = scmp.eq.s32.totalorder %s465_s16, 3  ;;  %s727_s26 = smov [#allocation8]  }
 0x29a   : > { %s381_s29 = sshll.u32 %s727_s26, 4  ;;  %s382_s29 = int_to_ptr.vmem [resolvable:$true] %s381_s29 }
 0x29b   : > { %s633_s3 = scalar_lea.vmem %s382_s29, 16  ;;  %s639_s17 = scalar_lea.vmem %s382_s29, 32 }
 0x29c   : > { %p634_p2 = scmp.ne.s32.totalorder %s382_s29, %s633_s3  ;;  %p640_p1 = scmp.lt.s32.totalorder %s382_s29, %s382_s29 }
 0x29d   : > { %p641_p12 = scmp.lt.s32.totalorder %s639_s17, %s633_s3 }
 0x29e   : > { %p635_p3 = pnand %p634_p2, %p915_p0 }
 0x29f   : > { %p642_p5 = por %p641_p12, %p640_p1 }
 0x2a0   : > { %p636_p4 = pneg %p635_p3 }
 0x2a2   : > { %p643_p9 = pnand %p642_p5, %p636_p4 }
 0x2a4   : > { %646 = shalt.err (!%p643_p9)
}
 0x2a5   : > { %s647_s5 = scalar_lea.hbm %s961_s2, 16 }
 0x2a6   : > { %p648_p10 = scmp.ne.s32.totalorder %s961_s2, %s647_s5  ;;  %p653_p13 = scmp.lt.u32.totalorder %s647_s5, %s961_s2 }
 0x2a8   : > { %p649_p6 = pnand %p648_p10, %p915_p0 }
 0x2aa   : > { %p650_p11 = pneg %p649_p6 }
 0x2ac   : > { %p655_p7 = pnand %p653_p13, %p650_p11 }
 0x2ae   : > { %658 = shalt.err (!%p655_p7)
}
 0x2af   : > { %499 = dma.vmem_to_hbm [thread:$0]  (%p915_p0), %s382_s29, 16, %s961_s2, [#allocation5]  }
 0x2b0   : > { %692 = dma.done.wait (%p915_p0), [#allocation5], 16  }
 0x2b1   : > { %694 = vsyncadd (%p915_p0), [#allocation5], 4294967280 }
 0x2b2 PF: > { %s19_s14 = sadd.s32 1, %s717_s14   ;;  %s965_s9 = smov %s701_s10 }
 0x2b3   : > { %p16_p8 = scmp.ge.s32.totalorder %s19_s14, 6   ;;  %s966_s10 = smov %s705_s11 }
 0x2b4   : > { %s967_s11 = smov %s798_s23  ;;  %s968_s12 = smov %s713_s13 }
 0x2b5   : > { %s969_s13 = smov %s971_s15  ;;  %18 = sbr.rel (!%p16_p8) target bundleno = 7 (0x7), region = 87 }
 0x2bc   :  { %394 = vsyncpa [#allocation4], 1 }
 0x2bd   :  { %396 = vsyncpa [#allocation4 + $0x1], 1 }
 0x2be   :  { %397 = vsyncpa [#allocation7], 1 }
 0x2bf   :  { %399 = vsyncpa [#allocation7 + $0x1], 1 }
 0x2c0   :  { %400 = vsyncpa [#allocation5], 1 }
 0x2c1   :  { %402 = vsyncpa [#allocation5 + $0x1], 1 }

</bundles_post_ra>
